<compile_context>
chip_gen: v5e
topology: v5e:2x2
jax: 0.10.0
libtpu: 0.0.40
codegen_flags: <defaults>
</compile_context>

<pallas_src>
import functools

import jax
import jax.numpy as jnp
from jax.experimental import pallas as pl
from jax.experimental.pallas import tpu as pltpu


# ----------------------------------------------------------------------------
# Kernels
# ----------------------------------------------------------------------------
def _enc_mean_kernel(x_ref, y_ref, w1x_ref, w1y_ref, b1_ref, w2_ref, b2_ref,
                     summ_ref, *, batch, inv_total):
    """Fused encoders + mean aggregation.

    grid = (n_enc, N // TN).  Per step: run encoder `e` on a TN-point tile of
    its context set and accumulate the (scaled) per-batch sum of latent codes
    directly into the resident output block summ_ref (B, latent).
    """
    e = pl.program_id(0)
    r = pl.program_id(1)

    @pl.when(jnp.logical_and(e == 0, r == 0))
    def _():
        summ_ref[...] = jnp.zeros_like(summ_ref)

    w1x = w1x_ref[0]          # (dx, H)  bf16
    w1y = w1y_ref[0]          # (dy, H)  bf16
    b1 = b1_ref[0]            # (1,  H)  f32
    w2 = w2_ref[0]            # (H,  L)  bf16
    b2 = b2_ref[0]            # (1,  L)  f32

    # Static unroll over the (small) batch dim; each iteration is pure 2-D
    # MXU matmuls, keeping the per-batch reduction trivial (no reshapes).
    for b in range(batch):
        x = x_ref[0, b].astype(jnp.bfloat16)      # (TN, dx)
        y = y_ref[0, b].astype(jnp.bfloat16)      # (TN, dy)
        # concat(x, y) @ W1 == x @ W1[:dx] + y @ W1[dx:]
        h = (jnp.dot(x, w1x, preferred_element_type=jnp.float32)
             + jnp.dot(y, w1y, preferred_element_type=jnp.float32)
             + b1)                                 # (TN, H) f32
        h = jnp.maximum(h, 0.0).astype(jnp.bfloat16)
        enc = jnp.dot(h, w2, preferred_element_type=jnp.float32) + b2   # (TN, L)
        summ_ref[b:b + 1, :] += jnp.sum(enc, axis=0, keepdims=True) * inv_total


def _dec_kernel(summ_ref, q_ref, w1s_ref, w1q_ref, b1_ref, w2_ref, b2_ref,
                o_ref, *, batch):
    """Fused decoders.

    grid = (n_dec, M // TM).  The repeated summary is never materialized:
    h_summ = summ @ W1_summ + b1 is computed once per block and broadcast
    over the query tile.
    """
    w1s = w1s_ref[0]          # (L,  H)  bf16
    w1q = w1q_ref[0]          # (dx, H)  bf16
    b1 = b1_ref[0]            # (1,  H)  f32
    w2 = w2_ref[0]            # (H, dy)  bf16
    b2 = b2_ref[0]            # (1, dy)  f32

    h_summ = (jnp.dot(summ_ref[...].astype(jnp.bfloat16), w1s,
                      preferred_element_type=jnp.float32) + b1)   # (B, H) f32

    for b in range(batch):
        q = q_ref[0, b].astype(jnp.bfloat16)      # (TM, dx)
        h = (jnp.dot(q, w1q, preferred_element_type=jnp.float32)
             + h_summ[b:b + 1, :])                # (TM, H)
        h = jnp.maximum(h, 0.0).astype(jnp.bfloat16)
        out = jnp.dot(h, w2, preferred_element_type=jnp.float32) + b2   # (TM, dy)
        # TODO(synk): with dy==1 this store is lane-sparse; pack multiple
        # decoder heads into one lane-dense slab if dy stays tiny at scale.
        o_ref[0, b] = out.astype(o_ref.dtype)


# ----------------------------------------------------------------------------
# pallas_call wrappers
# ----------------------------------------------------------------------------
_VMEM_LIMIT = 32 * 1024 * 1024


def _pick_row_tile(n):
    """Largest 8-aligned tile (<=512) dividing n; else the whole axis."""
    for t in (512, 256, 128, 64, 32, 16, 8):
        if n % t == 0:
            return t
    return n


def encode_aggregate_pallas(X, Y, W1x, W1y, B1, W2, B2):
    """X:(E,B,N,dx) Y:(E,B,N,dy) -> per-batch mean latent (B,L)."""
    n_enc, bsz, n_pts, dx = X.shape
    dy = Y.shape[-1]
    hid = W1x.shape[-1]
    lat = W2.shape[-1]
    tn = _pick_row_tile(n_pts)
    n_tiles = n_pts // tn
    inv_total = 1.0 / float(n_enc * n_pts)

    kernel = functools.partial(_enc_mean_kernel, batch=bsz, inv_total=inv_total)
    return pl.pallas_call(
        kernel,
        out_shape=jax.ShapeDtypeStruct((bsz, lat), jnp.float32),
        grid=(n_enc, n_tiles),
        in_specs=[
            pl.BlockSpec((1, bsz, tn, dx), lambda e, r: (e, 0, r, 0)),
            pl.BlockSpec((1, bsz, tn, dy), lambda e, r: (e, 0, r, 0)),
            pl.BlockSpec((1, dx, hid), lambda e, r: (e, 0, 0)),
            pl.BlockSpec((1, dy, hid), lambda e, r: (e, 0, 0)),
            pl.BlockSpec((1, 1, hid), lambda e, r: (e, 0, 0)),
            pl.BlockSpec((1, hid, lat), lambda e, r: (e, 0, 0)),
            pl.BlockSpec((1, 1, lat), lambda e, r: (e, 0, 0)),
        ],
        out_specs=pl.BlockSpec((bsz, lat), lambda e, r: (0, 0)),
        compiler_params=pltpu.CompilerParams(
            dimension_semantics=("arbitrary", "arbitrary"),
            vmem_limit_bytes=_VMEM_LIMIT),
    )(X, Y, W1x, W1y, B1, W2, B2)


def decode_pallas(summ, Q_all, W1s, W1q, B1, W2, B2):
    """summ:(B,L), Q_all:(D,B,M,dx) -> (D,B,M,dy)."""
    n_dec, bsz, m_pts, dx = Q_all.shape
    lat, hid = W1s.shape[1], W1s.shape[2]
    dy = W2.shape[-1]
    tm = _pick_row_tile(m_pts)
    n_tiles = m_pts // tm

    kernel = functools.partial(_dec_kernel, batch=bsz)
    return pl.pallas_call(
        kernel,
        out_shape=jax.ShapeDtypeStruct((n_dec, bsz, m_pts, dy), jnp.float32),
        grid=(n_dec, n_tiles),
        in_specs=[
            pl.BlockSpec((bsz, lat), lambda d, m: (0, 0)),
            pl.BlockSpec((1, bsz, tm, dx), lambda d, m: (d, 0, m, 0)),
            pl.BlockSpec((1, lat, hid), lambda d, m: (d, 0, 0)),
            pl.BlockSpec((1, dx, hid), lambda d, m: (d, 0, 0)),
            pl.BlockSpec((1, 1, hid), lambda d, m: (d, 0, 0)),
            pl.BlockSpec((1, hid, dy), lambda d, m: (d, 0, 0)),
            pl.BlockSpec((1, 1, dy), lambda d, m: (d, 0, 0)),
        ],
        out_specs=pl.BlockSpec((1, bsz, tm, dy), lambda d, m: (d, 0, m, 0)),
        compiler_params=pltpu.CompilerParams(
            dimension_semantics=("parallel", "parallel"),
            vmem_limit_bytes=_VMEM_LIMIT),
    )(summ, Q_all, W1s, W1q, B1, W2, B2)


# ----------------------------------------------------------------------------
# NeuralProcesses forward
# ----------------------------------------------------------------------------
def neural_processes_forward(Inp, Q, encoder_params, decoder_params):
    """
    Inp: list of (X_i, y_i), X_i: (B, N, dx), y_i: (B, N, dy)
    Q:   list of query tensors q_j: (B, M, dx)
    encoder_params[i] / decoder_params[j]: (W1, b1, W2, b2) f32, Linear layout.
    """
    dx = Inp[0][0].shape[-1]
    n_ctx = Inp[0][0].shape[1]
    # TODO(synk): the fused kernels assume equal context/query sizes and
    # identical MLP shapes per module; ragged sizes would need pad+mask.
    assert all(x.shape[1] == n_ctx for (x, _) in Inp)
    n_qry = Q[0].shape[1]
    assert all(q.shape[1] == n_qry for q in Q)

    # ---- stack encoder inputs / params (weights -> bf16 for the MXU) ----
    X_all = jnp.stack([x for (x, _) in Inp], axis=0)              # (E,B,N,dx)
    Y_all = jnp.stack([y for (_, y) in Inp], axis=0)              # (E,B,N,dy)
    W1x = jnp.stack([p[0][:dx] for p in encoder_params]).astype(jnp.bfloat16)
    W1y = jnp.stack([p[0][dx:] for p in encoder_params]).astype(jnp.bfloat16)
    B1e = jnp.stack([p[1].reshape(1, -1) for p in encoder_params])
    W2e = jnp.stack([p[2] for p in encoder_params]).astype(jnp.bfloat16)
    B2e = jnp.stack([p[3].reshape(1, -1) for p in encoder_params])

    inp_summ = encode_aggregate_pallas(X_all, Y_all, W1x, W1y, B1e, W2e, B2e)

    # ---- stack decoder inputs / params ----
    lat = W2e.shape[-1]
    Q_all = jnp.stack(Q, axis=0)                                  # (D,B,M,dx)
    W1s = jnp.stack([p[0][:lat] for p in decoder_params]).astype(jnp.bfloat16)
    W1q = jnp.stack([p[0][lat:] for p in decoder_params]).astype(jnp.bfloat16)
    B1d = jnp.stack([p[1].reshape(1, -1) for p in decoder_params])
    W2d = jnp.stack([p[2] for p in decoder_params]).astype(jnp.bfloat16)
    B2d = jnp.stack([p[3].reshape(1, -1) for p in decoder_params])

    out_all = decode_pallas(inp_summ, Q_all, W1s, W1q, B1d, W2d, B2d)
    return [out_all[d] for d in range(len(Q))]


# ----------------------------------------------------------------------------
# Deterministic parameters + pure-JAX reference
# ----------------------------------------------------------------------------
def make_mlp_params(key, din, hidden, dout):
    k1, k2 = jax.random.split(key)
    w1 = 0.1 * jax.random.normal(k1, (din, hidden), jnp.float32)
    b1 = jnp.zeros((1, hidden), jnp.float32)
    w2 = 0.1 * jax.random.normal(k2, (hidden, dout), jnp.float32)
    b2 = jnp.zeros((1, dout), jnp.float32)
    return (w1, b1, w2, b2)


def apply_mlp_ref(params, x3d):
    w1, b1, w2, b2 = params
    h = jnp.maximum(x3d @ w1 + b1, 0.0)
    return h @ w2 + b2


def reference_forward(Inp, Q, encoder_params, decoder_params):
    aux = []
    for (x, y), enc_p in zip(Inp, encoder_params):
        aux.append(apply_mlp_ref(enc_p, jnp.concatenate((x, y), axis=-1)))
    aux = jnp.concatenate(aux, axis=1)
    inp_summ = jnp.mean(aux, axis=1, keepdims=True)
    res = []
    for q, dec_p in zip(Q, decoder_params):
        summ_rep = jnp.repeat(inp_summ, q.shape[1], axis=1)
        res.append(apply_mlp_ref(dec_p, jnp.concatenate((summ_rep, q), axis=2)))
    return res


if __name__ == "__main__":
    B, dx, dy = 2, 2, 1
    hidden, latent = 32, 32
    n_ctx, n_qry = 8, 8
    n_enc, n_dec = 2, 2

    key = jax.random.PRNGKey(0)
    keys = jax.random.split(key, n_enc + n_dec + 2 * n_enc + n_dec)
    ki = iter(keys)

    encoder_params = [make_mlp_params(next(ki), dx + dy, hidden, latent)
                      for _ in range(n_enc)]
    decoder_params = [make_mlp_params(next(ki), latent + dx, hidden, dy)
                      for _ in range(n_dec)]

    Inp = []
    for _ in range(n_enc):
        X = jax.random.normal(next(ki), (B, n_ctx, dx), jnp.float32)
        Y = jax.random.normal(next(ki), (B, n_ctx, dy), jnp.float32)
        Inp.append((X, Y))
    Q = [jax.random.normal(next(ki), (B, n_qry, dx), jnp.float32)
         for _ in range(n_dec)]

    out = neural_processes_forward(Inp, Q, encoder_params, decoder_params)
    out = [jax.block_until_ready(o) for o in out]

    ref = reference_forward(Inp, Q, encoder_params, decoder_params)
    for o, r in zip(out, ref):
        assert o.shape == (B, n_qry, dy)
        # bf16 matmul operands (f32 accumulation) -> loosened tolerance.
        assert jnp.allclose(o, r, atol=2e-2, rtol=2e-2), \
            float(jnp.max(jnp.abs(o - r)))

    print("KERNEL_OK")
</pallas_src>

<mosaic_0001>
module attributes {stable_mosaic.version = 11 : i64} {
  func.func @_enc_mean_kernel(%arg0: i32, %arg1: i32, %arg2: memref<1x2x8x2xf32, #tpu.memory_space<vmem>>, %arg3: memref<1x2x8x1xf32, #tpu.memory_space<vmem>>, %arg4: memref<1x2x32xbf16, #tpu.memory_space<vmem>>, %arg5: memref<1x1x32xbf16, #tpu.memory_space<vmem>>, %arg6: memref<1x1x32xf32, #tpu.memory_space<vmem>>, %arg7: memref<1x32x32xbf16, #tpu.memory_space<vmem>>, %arg8: memref<1x1x32xf32, #tpu.memory_space<vmem>>, %arg9: memref<2x32xf32, #tpu.memory_space<vmem>>) attributes {dimension_semantics = [#tpu.dimension_semantics<arbitrary>, #tpu.dimension_semantics<arbitrary>], iteration_bounds = array<i64: 2, 1>, scalar_prefetch = 0 : i64, scratch_operands = 0 : i64, tpu.core_type = #tpu.core_type<tc>, window_params = [{transform_indices = @transform_0, window_bounds = array<i64: 1, 2, 8, 2>}, {transform_indices = @transform_1, window_bounds = array<i64: 1, 2, 8, 1>}, {transform_indices = @transform_2, window_bounds = array<i64: 1, 2, 32>}, {transform_indices = @transform_3, window_bounds = array<i64: 1, 1, 32>}, {transform_indices = @transform_4, window_bounds = array<i64: 1, 1, 32>}, {transform_indices = @transform_5, window_bounds = array<i64: 1, 32, 32>}, {transform_indices = @transform_6, window_bounds = array<i64: 1, 1, 32>}, {pipeline_mode = #tpu.pipeline_mode<synchronous>, transform_indices = @transform_7, window_bounds = array<i64: 2, 32>}]} {
    %c0_i32 = arith.constant 0 : i32
    %0 = arith.cmpi eq, %arg0, %c0_i32 : i32
    %c0_i32_0 = arith.constant 0 : i32
    %1 = arith.cmpi eq, %arg1, %c0_i32_0 : i32
    %2 = arith.andi %0, %1 : i1
    %3 = arith.extui %2 : i1 to i32
    %c0_i32_1 = arith.constant 0 : i32
    %4 = arith.cmpi ne, %3, %c0_i32_1 : i32
    scf.if %4 {
      %cst_50 = arith.constant 0.000000e+00 : f32
      %63 = vector.broadcast %cst_50 : f32 to vector<2x32xf32>
      %c0_51 = arith.constant 0 : index
      %c0_52 = arith.constant 0 : index
      %64 = vector.load %arg9[%c0_51, %c0_52] : memref<2x32xf32, #tpu.memory_space<vmem>>, vector<2x32xf32>
      tpu.vector_store %arg9[%c0_51, %c0_52], %63 {strides = array<i32>} : memref<2x32xf32, #tpu.memory_space<vmem>>, vector<2x32xf32>,
    } else {
    }
    %c0 = arith.constant 0 : index
    %c0_2 = arith.constant 0 : index
    %c0_3 = arith.constant 0 : index
    %5 = vector.load %arg4[%c0, %c0_2, %c0_3] : memref<1x2x32xbf16, #tpu.memory_space<vmem>>, vector<1x2x32xbf16>
    %6 = vector.shape_cast %5 : vector<1x2x32xbf16> to vector<2x32xbf16>
    %c0_4 = arith.constant 0 : index
    %c0_5 = arith.constant 0 : index
    %c0_6 = arith.constant 0 : index
    %7 = vector.load %arg5[%c0_4, %c0_5, %c0_6] : memref<1x1x32xbf16, #tpu.memory_space<vmem>>, vector<1x1x32xbf16>
    %8 = vector.shape_cast %7 : vector<1x1x32xbf16> to vector<1x32xbf16>
    %c0_7 = arith.constant 0 : index
    %c0_8 = arith.constant 0 : index
    %c0_9 = arith.constant 0 : index
    %9 = vector.load %arg6[%c0_7, %c0_8, %c0_9] : memref<1x1x32xf32, #tpu.memory_space<vmem>>, vector<1x1x32xf32>
    %10 = vector.shape_cast %9 : vector<1x1x32xf32> to vector<1x32xf32>
    %c0_10 = arith.constant 0 : index
    %c0_11 = arith.constant 0 : index
    %c0_12 = arith.constant 0 : index
    %11 = vector.load %arg7[%c0_10, %c0_11, %c0_12] : memref<1x32x32xbf16, #tpu.memory_space<vmem>>, vector<1x32x32xbf16>
    %12 = vector.shape_cast %11 : vector<1x32x32xbf16> to vector<32x32xbf16>
    %c0_13 = arith.constant 0 : index
    %c0_14 = arith.constant 0 : index
    %c0_15 = arith.constant 0 : index
    %13 = vector.load %arg8[%c0_13, %c0_14, %c0_15] : memref<1x1x32xf32, #tpu.memory_space<vmem>>, vector<1x1x32xf32>
    %14 = vector.shape_cast %13 : vector<1x1x32xf32> to vector<1x32xf32>
    %c0_16 = arith.constant 0 : index
    %c0_17 = arith.constant 0 : index
    %c0_18 = arith.constant 0 : index
    %c0_19 = arith.constant 0 : index
    %15 = vector.load %arg2[%c0_16, %c0_17, %c0_18, %c0_19] : memref<1x2x8x2xf32, #tpu.memory_space<vmem>>, vector<1x1x8x2xf32>
    %16 = vector.shape_cast %15 : vector<1x1x8x2xf32> to vector<8x2xf32>
    %17 = arith.truncf %16 : vector<8x2xf32> to vector<8x2xbf16>
    %c0_20 = arith.constant 0 : index
    %c0_21 = arith.constant 0 : index
    %c0_22 = arith.constant 0 : index
    %c0_23 = arith.constant 0 : index
    %18 = vector.load %arg3[%c0_20, %c0_21, %c0_22, %c0_23] : memref<1x2x8x1xf32, #tpu.memory_space<vmem>>, vector<1x1x8x1xf32>
    %19 = vector.shape_cast %18 : vector<1x1x8x1xf32> to vector<8x1xf32>
    %20 = arith.truncf %19 : vector<8x1xf32> to vector<8x1xbf16>
    %cst = arith.constant dense<0.000000e+00> : vector<8x32xf32>
    %21 = tpu.matmul %17, %6, %cst {dimension_numbers = #tpu.dot_dimension_numbers<[1], [0], [0], [1], [0, 0, 1, 1], [], []>} : vector<8x2xbf16>, vector<2x32xbf16>, vector<8x32xf32> -> vector<8x32xf32>
    %cst_24 = arith.constant dense<0.000000e+00> : vector<8x32xf32>
    %22 = tpu.matmul %20, %8, %cst_24 {dimension_numbers = #tpu.dot_dimension_numbers<[1], [0], [0], [1], [0, 0, 1, 1], [], []>} : vector<8x1xbf16>, vector<1x32xbf16>, vector<8x32xf32> -> vector<8x32xf32>
    %23 = arith.addf %21, %22 : vector<8x32xf32>
    %24 = vector.broadcast %10 : vector<1x32xf32> to vector<8x32xf32>
    %25 = arith.addf %23, %24 : vector<8x32xf32>
    %cst_25 = arith.constant 0.000000e+00 : f32
    %26 = vector.broadcast %cst_25 : f32 to vector<8x32xf32>
    %27 = arith.maximumf %25, %26 : vector<8x32xf32>
    %28 = arith.truncf %27 : vector<8x32xf32> to vector<8x32xbf16>
    %cst_26 = arith.constant dense<0.000000e+00> : vector<8x32xf32>
    %29 = tpu.matmul %28, %12, %cst_26 {dimension_numbers = #tpu.dot_dimension_numbers<[1], [0], [0], [1], [0, 0, 1, 1], [], []>} : vector<8x32xbf16>, vector<32x32xbf16>, vector<8x32xf32> -> vector<8x32xf32>
    %30 = vector.broadcast %14 : vector<1x32xf32> to vector<8x32xf32>
    %31 = arith.addf %29, %30 : vector<8x32xf32>
    %c0_27 = arith.constant 0 : index
    %c0_28 = arith.constant 0 : index
    %32 = vector.load %arg9[%c0_27, %c0_28] : memref<2x32xf32, #tpu.memory_space<vmem>>, vector<1x32xf32>
    %cst_29 = arith.constant dense<0.000000e+00> : vector<32xf32>
    %33 = vector.multi_reduction <add>, %31, %cst_29 [0] : vector<8x32xf32> to vector<32xf32>
    %34 = vector.shape_cast %33 : vector<32xf32> to vector<1x32xf32>
    %cst_30 = arith.constant 6.250000e-02 : f32
    %35 = vector.broadcast %cst_30 : f32 to vector<1x32xf32>
    %36 = arith.mulf %34, %35 : vector<1x32xf32>
    %37 = arith.addf %32, %36 : vector<1x32xf32>
    %c0_31 = arith.constant 0 : index
    %c0_32 = arith.constant 0 : index
    %38 = vector.load %arg9[%c0_31, %c0_32] : memref<2x32xf32, #tpu.memory_space<vmem>>, vector<1x32xf32>
    tpu.vector_store %arg9[%c0_31, %c0_32], %37 {strides = array<i32>} : memref<2x32xf32, #tpu.memory_space<vmem>>, vector<1x32xf32>,
    %c0_33 = arith.constant 0 : index
    %c1 = arith.constant 1 : index
    %c0_34 = arith.constant 0 : index
    %c0_35 = arith.constant 0 : index
    %39 = vector.load %arg2[%c0_33, %c1, %c0_34, %c0_35] : memref<1x2x8x2xf32, #tpu.memory_space<vmem>>, vector<1x1x8x2xf32>
    %40 = vector.shape_cast %39 : vector<1x1x8x2xf32> to vector<8x2xf32>
    %41 = arith.truncf %40 : vector<8x2xf32> to vector<8x2xbf16>
    %c0_36 = arith.constant 0 : index
    %c1_37 = arith.constant 1 : index
    %c0_38 = arith.constant 0 : index
    %c0_39 = arith.constant 0 : index
    %42 = vector.load %arg3[%c0_36, %c1_37, %c0_38, %c0_39] : memref<1x2x8x1xf32, #tpu.memory_space<vmem>>, vector<1x1x8x1xf32>
    %43 = vector.shape_cast %42 : vector<1x1x8x1xf32> to vector<8x1xf32>
    %44 = arith.truncf %43 : vector<8x1xf32> to vector<8x1xbf16>
    %cst_40 = arith.constant dense<0.000000e+00> : vector<8x32xf32>
    %45 = tpu.matmul %41, %6, %cst_40 {dimension_numbers = #tpu.dot_dimension_numbers<[1], [0], [0], [1], [0, 0, 1, 1], [], []>} : vector<8x2xbf16>, vector<2x32xbf16>, vector<8x32xf32> -> vector<8x32xf32>
    %cst_41 = arith.constant dense<0.000000e+00> : vector<8x32xf32>
    %46 = tpu.matmul %44, %8, %cst_41 {dimension_numbers = #tpu.dot_dimension_numbers<[1], [0], [0], [1], [0, 0, 1, 1], [], []>} : vector<8x1xbf16>, vector<1x32xbf16>, vector<8x32xf32> -> vector<8x32xf32>
    %47 = arith.addf %45, %46 : vector<8x32xf32>
    %48 = vector.broadcast %10 : vector<1x32xf32> to vector<8x32xf32>
    %49 = arith.addf %47, %48 : vector<8x32xf32>
    %cst_42 = arith.constant 0.000000e+00 : f32
    %50 = vector.broadcast %cst_42 : f32 to vector<8x32xf32>
    %51 = arith.maximumf %49, %50 : vector<8x32xf32>
    %52 = arith.truncf %51 : vector<8x32xf32> to vector<8x32xbf16>
    %cst_43 = arith.constant dense<0.000000e+00> : vector<8x32xf32>
    %53 = tpu.matmul %52, %12, %cst_43 {dimension_numbers = #tpu.dot_dimension_numbers<[1], [0], [0], [1], [0, 0, 1, 1], [], []>} : vector<8x32xbf16>, vector<32x32xbf16>, vector<8x32xf32> -> vector<8x32xf32>
    %54 = vector.broadcast %14 : vector<1x32xf32> to vector<8x32xf32>
    %55 = arith.addf %53, %54 : vector<8x32xf32>
    %c1_44 = arith.constant 1 : index
    %c0_45 = arith.constant 0 : index
    %56 = vector.load %arg9[%c1_44, %c0_45] : memref<2x32xf32, #tpu.memory_space<vmem>>, vector<1x32xf32>
    %cst_46 = arith.constant dense<0.000000e+00> : vector<32xf32>
    %57 = vector.multi_reduction <add>, %55, %cst_46 [0] : vector<8x32xf32> to vector<32xf32>
    %58 = vector.shape_cast %57 : vector<32xf32> to vector<1x32xf32>
    %cst_47 = arith.constant 6.250000e-02 : f32
    %59 = vector.broadcast %cst_47 : f32 to vector<1x32xf32>
    %60 = arith.mulf %58, %59 : vector<1x32xf32>
    %61 = arith.addf %56, %60 : vector<1x32xf32>
    %c1_48 = arith.constant 1 : index
    %c0_49 = arith.constant 0 : index
    %62 = vector.load %arg9[%c1_48, %c0_49] : memref<2x32xf32, #tpu.memory_space<vmem>>, vector<1x32xf32>
    tpu.vector_store %arg9[%c1_48, %c0_49], %61 {strides = array<i32>} : memref<2x32xf32, #tpu.memory_space<vmem>>, vector<1x32xf32>,
    return
  }
  func.func @transform_0(%arg0: i32, %arg1: i32) -> (i32, i32, i32, i32) {
    %c0_i32 = arith.constant 0 : i32
    %c0_i32_0 = arith.constant 0 : i32
    %c0_i32_1 = arith.constant 0 : i32
    return %arg0, %c0_i32, %arg1, %c0_i32_0 : i32, i32, i32, i32
  }
  func.func @transform_1(%arg0: i32, %arg1: i32) -> (i32, i32, i32, i32) {
    %c0_i32 = arith.constant 0 : i32
    %c0_i32_0 = arith.constant 0 : i32
    %c0_i32_1 = arith.constant 0 : i32
    return %arg0, %c0_i32, %arg1, %c0_i32_0 : i32, i32, i32, i32
  }
  func.func @transform_2(%arg0: i32, %arg1: i32) -> (i32, i32, i32) {
    %c0_i32 = arith.constant 0 : i32
    %c0_i32_0 = arith.constant 0 : i32
    %c0_i32_1 = arith.constant 0 : i32
    return %arg0, %c0_i32, %c0_i32_0 : i32, i32, i32
  }
  func.func @transform_3(%arg0: i32, %arg1: i32) -> (i32, i32, i32) {
    %c0_i32 = arith.constant 0 : i32
    %c0_i32_0 = arith.constant 0 : i32
    %c0_i32_1 = arith.constant 0 : i32
    return %arg0, %c0_i32, %c0_i32_0 : i32, i32, i32
  }
  func.func @transform_4(%arg0: i32, %arg1: i32) -> (i32, i32, i32) {
    %c0_i32 = arith.constant 0 : i32
    %c0_i32_0 = arith.constant 0 : i32
    %c0_i32_1 = arith.constant 0 : i32
    return %arg0, %c0_i32, %c0_i32_0 : i32, i32, i32
  }
  func.func @transform_5(%arg0: i32, %arg1: i32) -> (i32, i32, i32) {
    %c0_i32 = arith.constant 0 : i32
    %c0_i32_0 = arith.constant 0 : i32
    %c0_i32_1 = arith.constant 0 : i32
    return %arg0, %c0_i32, %c0_i32_0 : i32, i32, i32
  }
  func.func @transform_6(%arg0: i32, %arg1: i32) -> (i32, i32, i32) {
    %c0_i32 = arith.constant 0 : i32
    %c0_i32_0 = arith.constant 0 : i32
    %c0_i32_1 = arith.constant 0 : i32
    return %arg0, %c0_i32, %c0_i32_0 : i32, i32, i32
  }
  func.func @transform_7(%arg0: i32, %arg1: i32) -> (i32, i32) {
    %c0_i32 = arith.constant 0 : i32
    %c0_i32_0 = arith.constant 0 : i32
    %c0_i32_1 = arith.constant 0 : i32
    return %c0_i32, %c0_i32_0 : i32, i32
  }
}

</mosaic_0001>

<bundles_post_ra>
// kernel: tpu_custom_call.1
= control target key start
LH: loop header
LB: loop body
LE: loop exit
PB: predicated region body
PF: predicated region fallthrough
CT: control target
= control target key end

     0   :  { %12 = vsyncpa [#allocation3], 0  ;;  %s877_s24 = smov 0   ;;  %s879_s25 = smov 0   ;;  %s962_s0 = inlined_call_operand.vmem [shape: f32[2,2,8,2], index: 0, kind: input, shape index: {}]   ;;  %s963_s1 = inlined_call_operand.vmem [shape: f32[2,2,8,1], index: 1, kind: input, shape index: {}]   ;;  %s964_s2 = inlined_call_operand.vmem [shape: bf16[2,2,32], index: 2, kind: input, shape index: {}]   ;;  %s965_s3 = inlined_call_operand.vmem [shape: bf16[2,1,32], index: 3, kind: input, shape index: {}]   ;;  %s966_s4 = inlined_call_operand.vmem [shape: f32[2,1,32], index: 4, kind: input, shape index: {}]   ;;  %s967_s5 = inlined_call_operand.vmem [shape: bf16[2,32,32], index: 5, kind: input, shape index: {}]   ;;  %s968_s6 = inlined_call_operand.vmem [shape: f32[2,1,32], index: 6, kind: input, shape index: {}]   ;;  %s969_s7 = inlined_call_operand.hbm [shape: f32[2,32], index: 7, kind: output, shape index: {}]  }
   0x1   :  { %s881_s26 = smov 0  }
   0x2 LB: > { %s706_s27 = sadd.s32 4294967295, %s832_s26   ;;  %s30_s28 = sadd.s32 1, %s828_s25  ;;  %s832_s26 = sphi %s881_s26, %s18_s26   ;;  %s828_s25 = sphi %s879_s25, %s971_s25   ;;  %s824_s24 = sphi %s877_s24, %s970_s24  }
   0x3   : > { %p32_p0 = scmp.ge.s32.totalorder %s30_s28, 2  ;;  %p709_p1 = scmp.ge.s32.totalorder %s832_s26, 1 }
   0x4   : > { %p307_p2 = scmp.lt.s32.totalorder %s832_s26, 3 }
   0x5   : > { %s973_s28 = smov (%p32_p0, %s30_s28), 0 }
   0x6   : > { %p308_p3 = pnand %p709_p1, %p307_p2 }
   0x7   : > { %p362_p4 = scmp.lt.s32.totalorder (!%p308_p3), %s824_s24, 1  ;;  %p396_p5 = scmp.eq.s32.totalorder (!%p308_p3), %s824_s24, 0 }
   0x8   : > { %311 = sbr.rel (%p308_p3) target bundleno = 324 (0x144), region = 48 }
   0xd   : > { %s975_s24 = smov (!%p362_p4, %s824_s24), 1  ;;  %401 = sbr.rel (!%p396_p5) target bundleno = 18 (0x12), region = 52  ;;  %vm402_vm0 = vcmask (%p396_p5), 254976   ;;  %v834_v0 = vmov (%p396_p5), 0.0  }
   0xe   : > { %s737_s29 = sshll.u32 %s975_s24, 4  ;;  %s380_s9 = scalar_lea.vmem %s964_s2, %s975_s24  ;;  %403 = vst.msk [vmem:[#allocation2] sm:$0x3] (%p396_p5), %vm402_vm0, %v834_v0 }
   0xf   : > { %s906_s12 = scalar_lea.vmem %s962_s0, %s737_s29  ;;  %s377_s15 = scalar_lea.vmem %s963_s1, %s737_s29 }
  0x10   : > { %s383_s18 = scalar_lea.vmem %s965_s3, %s975_s24  ;;  %s386_s21 = scalar_lea.vmem %s966_s4, %s975_s24 }
  0x11   : > { %s922_s30 = scalar_lea.vmem %s967_s5, %s737_s29  ;;  %s394_s11 = scalar_lea.vmem %s968_s6, %s975_s24 }
  0x12 PF: > { %v405_v1 = vld [vmem:[%s383_s18] sm:$0x1]  ;;  %vm420_vm1 = vcmask 1040384   ;;  %v835_v3 = vmov 0   ;;  %vm439_vm2 = vcmask 15360   ;;  %v729_v10 = vld [vmem:[%s377_s15 + $0x8] sm:$0xff] }
  0x13   : > { %v404_v2 = vld [vmem:[%s380_s9] sm:$0x1]  ;;  %v422_v4 = vsel %vm420_vm1, 65535, %v835_v3  ;;  %v514_v12 = vpack.c.bf16 %v729_v10, %v729_v10  ;;  %vm416_vm3 = vcmask 7168   ;;  %v728_v13 = vld [vmem:[%s906_s12 + $0x8] sm:$0xff]  ;;  %vm480_vm4 = vcmask 261120  }
  0x14   : > { %v444_v5 = vsel %vm420_vm1, %v404_v2, 0  ;;  %v414_v6 = vld [vmem:[%s377_s15] sm:$0xff]  ;;  %v424_v8 = vand.u32 %v422_v4, %v405_v1  ;;  %v511_v14 = vpack.c.bf16 %v728_v13, %v728_v13  ;;  %v742_v15 = vld [vmem:[%s922_s30 + $0x8] sm:$0xff]  ;;  %vm507_vm5 = vcmask 253952   ;;  %s836_s24 = smov [#allocation2]   ;;  %s585_s17 = sshll.u32 %s969_s7, 4  ;;  %s586_s17 = int_to_ptr.hbm [resolvable:$true] %s585_s17 }
  0x15   : > { %v412_v7 = vld [vmem:[%s906_s12] sm:$0xff]  ;;  %453 = vmatpush.bf16.msra.mxu1 %v444_v5  ;;  %v415_v11 = vpack.c.bf16 %v414_v6, %v414_v6  ;;  %490 = vmatpush.bf16.msra.mxu2 %v742_v15  ;;  %s583_s14 = sshll.u32 %s836_s24, 4  ;;  %p747_p6 = scmp.eq.s32.totalorder %s706_s27, 1  ;;  %s584_s14 = int_to_ptr.vmem [resolvable:$true] %s583_s14 }
  0x16   : > { %v413_v9 = vpack.c.bf16 %v412_v7, %v412_v7  ;;  %433 = vmatpush.bf16.msra.mxu0 %v424_v8  ;;  %525 = vmatpush.bf16.msra.mxu3 %v424_v8  ;;  %v741_v16 = vld [vmem:[%s922_s30] sm:$0xff] }
  0x17   : > { %v776_v18 = vld [vmem:[%s386_s21] ss:$0 sm:$0xff]  ;;  %v566_v58 = vld [vmem:[#allocation2 + $0x1] sm:$0x1] }
  0x18   : > { %718 = vmatmul.msk.bf16.vlgmr.msra.gmra.mxu1 %vm439_vm2, %v413_v9  ;;  %v777_v34 = vld [vmem:[%s394_s11] ss:$0 sm:$0xff] }
  0x19   : > { %717 = vmatmul.msk.bf16.vlgmr.msra.gmra.mxu0 %vm416_vm3, %v415_v11  ;;  %730 = vmatmul.msk.bf16.vlgmr.msra.gmra.mxu3 %vm416_vm3, %v514_v12  ;;  %v497_v49 = vld [vmem:[#allocation2] sm:$0x1] }
  0x1a   : > { %541 = vmatpush.bf16.msrb.mxu0 %v444_v5  ;;  %559 = vmatpush.bf16.msrb.mxu1 %v742_v15 }
  0x1b   : > { %491 = vmatpush.bf16.msra.mxu2 %v741_v16 }
  0x1e   : > { %560 = vmatpush.bf16.msrb.mxu1 %v741_v16 }
  0x29   : > { %731 = vmatmul.msk.bf16.vlgmr.msrb.gmra.mxu0 %vm439_vm2, %v511_v14 }
  0x95   : > { %v455_v17 = vpop.f32.mrf.mxu1 }
  0x96   : > { %v435_v19 = vpop.f32.mrf.mxu0 }
  0x97   : > { %v456_v20 = vadd.f32 %v455_v17, %v435_v19 }
  0x99   : > { %v462_v21 = vadd.f32 %v776_v18, %v456_v20 }
  0x9b   : > { %v463_v22 = vmax.f32 %v462_v21, 0.0 }
  0x9c   : > { %v527_v23 = vpop.f32.mrf.mxu3 }
  0x9d   : > { %v457_v24 = vpop.f32.mrf.mxu1  ;;  %v464_v25 = vpack.c.bf16 %v463_v22, %v463_v22 }
  0x9e   : > { %v437_v26 = vpop.f32.mrf.mxu0 }
  0x9f   : > { %727 = vmatmul.msk.bf16.vlgmr.msra.gmra.mxu2 %vm480_vm4, %v464_v25 }
  0xa4   : > { %v529_v27 = vpop.f32.mrf.mxu3 }
  0xa6   : > { %v543_v28 = vpop.f32.mrf.mxu0 }
  0xa7   : > { %v544_v29 = vadd.f32 %v543_v28, %v527_v23 }
  0xa9   : > { %v547_v30 = vadd.f32 %v776_v18, %v544_v29 }
  0xab   : > { %v548_v31 = vmax.f32 %v547_v30, 0.0 }
  0xad   : > { %v549_v32 = vpack.c.bf16 %v548_v31, %v548_v31 }
  0xae   : > { %v545_v33 = vpop.f32.mrf.mxu0 }
  0xaf   : > { %732 = vmatmul.msk.bf16.vlgmr.msrb.gmra.mxu1 %vm480_vm4, %v549_v32 }
 0x122   : > { %v493_v35 = vpop.f32.mrf.mxu2 }
 0x123   : > { %v494_v36 = vadd.f32 %v777_v34, %v493_v35 }
 0x125   : > { %v498_v37 = vsel %vm480_vm4, %v494_v36, 0.0 }
 0x126   : > { %v499_v38 = vrot.slane %v498_v37, 4 }
 0x128   : > { %v500_v39 = vadd.f32 %v499_v38, %v498_v37 }
 0x12a   : > { %v501_v40 = vrot.slane %v500_v39, 2  ;;  %v495_v41 = vpop.f32.mrf.mxu2 }
 0x12c   : > { %v502_v42 = vadd.f32 %v501_v40, %v500_v39  ;;  %v562_v43 = vpop.f32.mrf.mxu1 }
 0x12d   : > { %v563_v44 = vadd.f32 %v777_v34, %v562_v43 }
 0x12e   : > { %v503_v45 = vrot.slane %v502_v42, 1 }
 0x12f   : > { %v567_v46 = vsel %vm480_vm4, %v563_v44, 0.0 }
 0x130   : > { %v504_v47 = vadd.f32 %v503_v45, %v502_v42  ;;  %v568_v48 = vrot.slane %v567_v46, 4 }
 0x132   : > { %v505_v50 = vmul.f32 0.0625, %v504_v47  ;;  %v569_v51 = vadd.f32 %v568_v48, %v567_v46 }
 0x134   : > { %v570_v52 = vrot.slane %v569_v51, 2  ;;  %v564_v53 = vpop.f32.mrf.mxu1  ;;  %v506_v54 = vadd.f32 %v505_v50, %v497_v49 }
 0x136   : > { %v571_v55 = vadd.f32 %v570_v52, %v569_v51  ;;  %508 = vst.msk [vmem:[#allocation2] sm:$0x1] %vm507_vm5, %v506_v54 }
 0x138   : > { %v572_v56 = vrot.slane %v571_v55, 1 }
 0x13a   : > { %v573_v57 = vadd.f32 %v572_v56, %v571_v55 }
 0x13c   : > { %v574_v59 = vmul.f32 0.0625, %v573_v57 }
 0x13e   : > { %v575_v60 = vadd.f32 %v574_v59, %v566_v58 }
 0x140   : > { %576 = vst.msk [vmem:[#allocation2 + $0x1] sm:$0x1] %vm507_vm5, %v575_v60 }
 0x141   : > { %744 = dma.vmem_to_hbm [thread:$0]  (%p747_p6), %s584_s14, 32, %s586_s17, [#allocation3]  }
 0x142   : > { %819 = dma.done.wait (%p747_p6), [#allocation3], 32  }
 0x143   : > { %821 = vsyncadd (%p747_p6), [#allocation3], 4294967264 }
 0x144 PF: > { %s18_s26 = sadd.s32 1, %s832_s26   ;;  %s970_s24 = smov %s828_s25 }
 0x145   : > { %p15_p7 = scmp.ge.s32.totalorder %s18_s26, 4   ;;  %s971_s25 = smov %s973_s28 }
 0x147   :  { %17 = sbr.rel (!%p15_p7) target bundleno = 2 (0x2), region = 99 }
 0x14c   :  { %599 = vsyncpa [#allocation3], 1 }
 0x14d   :  { %601 = vsyncpa [#allocation3 + $0x1], 1 }

</bundles_post_ra>
